<compile_context>
chip_gen: v7x
topology: tpu7x:2x2x1
jax: 0.10.0
libtpu: 0.0.40
codegen_flags: <defaults>
</compile_context>

<pallas_src>
import functools

import jax
import jax.numpy as jnp
from jax.experimental import pallas as pl
from jax.experimental.pallas import tpu as pltpu


_LANES = 128
_MAX_TILE_HW = 32 * 1024            # bounds the unrolled per-chunk loop
_STEP_BYTES_TARGET = 2 * 1024 * 1024  # aim >= ~2 MiB of streamed input / step


def _round_up(v, m):
    return (v + m - 1) // m * m


def _vmem_capacity_bytes():
    # Generation-aware VMEM ceiling (v5e/v6e: 128 MiB, v7x: 64 MiB per TC).
    # Fall back to the smallest (v7x) figure if the query is unavailable.
    try:
        return int(getattr(pltpu.get_tpu_info(), "vmem_capacity_bytes"))
    except Exception:
        return 64 * 1024 * 1024


def _choose_tile(hw, bytes_per_lane, vmem_cap):
    """Pick the spatial tile (lane count) from a bytes-per-step target."""
    hw_pad = _round_up(hw, _LANES)
    target = _STEP_BYTES_TARGET // max(bytes_per_lane, 1)
    # 2 pipeline buffers per input must fit well inside the per-gen VMEM.
    vmem_max = int(vmem_cap * 0.4) // max(2 * bytes_per_lane, 1)
    tile = min(target, vmem_max, _MAX_TILE_HW)
    tile = max(512, (tile // 512) * 512)
    return hw_pad if hw_pad <= tile else tile


def _dice_partial_kernel(x_ref, t_ref, inter_ref, union_ref, *,
                         hw, tile_hw, num_h_per_split, needs_mask,
                         num_classes, labels):
    """Accumulate per-class inter / union partial sums for one (n, p) slice.

    x_ref:     (1, C, tile)        logits (any float dtype, upcast here)
    t_ref:     (1, C|1, tile)      dense target (float) or int class labels
    inter_ref: (1, 1, C, 128)      resident partial-sum accumulator (f32)
    union_ref: (1, 1, C, 128)      resident partial-sum accumulator (f32)
    """
    h = pl.program_id(2)

    @pl.when(h == 0)
    def _():
        inter_ref[...] = jnp.zeros_like(inter_ref)
        union_ref[...] = jnp.zeros_like(union_ref)

    num_chunks = tile_hw // _LANES

    if needs_mask:
        base = (pl.program_id(1) * num_h_per_split + h) * tile_hw
        lane_pos = jax.lax.broadcasted_iota(jnp.int32, (1, _LANES), 1)
    if labels:
        class_ids = jax.lax.broadcasted_iota(jnp.int32, (num_classes, _LANES), 0)

    inter = inter_ref[0, 0]                       # (C, 128) f32, classes on sublanes
    union = union_ref[0, 0]
    for j in range(num_chunks):                   # static unroll: 128-lane chunks
        sl = slice(j * _LANES, (j + 1) * _LANES)
        xj = x_ref[0, :, sl].astype(jnp.float32)  # (C, 128) logits, f32 in-VMEM
        if labels:
            lj = t_ref[0, :, sl].astype(jnp.int32)            # (1, 128)
            tj = (class_ids == lj).astype(jnp.float32)        # in-kernel one-hot
        else:
            tj = t_ref[0, :, sl].astype(jnp.float32)          # (C, 128)
        if needs_mask:
            valid = (base + j * _LANES + lane_pos) < hw       # (1, 128)
            xj = jnp.where(valid, xj, 0.0)    # keep softmax finite on padding
            tj = jnp.where(valid, tj, 0.0)
        # softmax over the channel (sublane) axis == log_softmax(dim=1).exp()
        m = jnp.max(xj, axis=0, keepdims=True)
        e = jnp.exp(xj - m)
        pj = e * pl.reciprocal(jnp.sum(e, axis=0, keepdims=True))  # exact recip
        if needs_mask:
            pj = jnp.where(valid, pj, 0.0)
        inter = inter + pj * tj
        union = union + (pj + tj)                 # fused union reduction
    inter_ref[0, 0] = inter
    union_ref[0, 0] = union


def _launch(x3, t3, *, labels, num_classes, tile_hw, spatial_splits):
    N, _, HW = x3.shape
    C = num_classes
    t_sub = 1 if labels else C
    bytes_per_lane = C * x3.dtype.itemsize + t_sub * t3.dtype.itemsize
    vmem_cap = _vmem_capacity_bytes()

    if tile_hw is None:
        tile = _choose_tile(HW, bytes_per_lane, vmem_cap)
    else:
        tile = min(int(tile_hw), _round_up(HW, _LANES))
        assert tile % _LANES == 0, "tile_hw must be a multiple of 128"

    num_h = pl.cdiv(HW, tile)
    if spatial_splits is None:
        # Give the 2nd TensorCore (v7x) spatial work when batch alone can't;
        # the same total step count makes this harmless on 1-TC chips.
        spatial_splits = 2 if (N == 1 and num_h >= 8) else 1
    P = max(1, min(int(spatial_splits), num_h))
    num_h_p = pl.cdiv(num_h, P)
    overflow = (P * num_h_p) > num_h
    needs_mask = (P * num_h_p * tile) != HW

    if overflow:
        # Clamp overflow steps onto the last real tile; the in-kernel lane
        # mask (computed from the unclamped index) zeroes their contribution.
        def spatial_idx(p, h):
            return jnp.minimum(p * num_h_p + h, num_h - 1)
    else:
        def spatial_idx(p, h):
            return p * num_h_p + h

    kernel = functools.partial(
        _dice_partial_kernel, hw=HW, tile_hw=tile, num_h_per_split=num_h_p,
        needs_mask=needs_mask, num_classes=C, labels=labels)

    # Real footprint: 2 double-buffered input blocks + resident output blocks.
    need = 2 * tile * bytes_per_lane + 4 * C * _LANES * 4 + (8 << 20)
    vmem_limit = int(min(max(need, 32 << 20), int(0.9 * vmem_cap)))

    inter_out, union_out = pl.pallas_call(
        kernel,
        out_shape=(jax.ShapeDtypeStruct((N, P, C, _LANES), jnp.float32),
                   jax.ShapeDtypeStruct((N, P, C, _LANES), jnp.float32)),
        grid_spec=pltpu.PrefetchScalarGridSpec(
            num_scalar_prefetch=0,
            grid=(N, P, num_h_p),
            in_specs=[
                pl.BlockSpec((1, C, tile),
                             lambda n, p, h: (n, 0, spatial_idx(p, h))),
                pl.BlockSpec((1, t_sub, tile),
                             lambda n, p, h: (n, 0, spatial_idx(p, h))),
            ],
            out_specs=[
                pl.BlockSpec((1, 1, C, _LANES), lambda n, p, h: (n, p, 0, 0)),
                pl.BlockSpec((1, 1, C, _LANES), lambda n, p, h: (n, p, 0, 0)),
            ],
        ),
        compiler_params=pltpu.CompilerParams(
            dimension_semantics=("parallel", "parallel", "arbitrary"),
            vmem_limit_bytes=vmem_limit),
    )(x3, t3)
    return inter_out, union_out


def _finish(inter_out, union_out, smooth):
    # Tiny O(N*P*C*128) combine: sum partials, dice ratio, mean — exactly
    # torch: 1 - (2*inter + s) / (union + s).clamp_min(1e-8), then mean().
    inter = jnp.sum(inter_out, axis=(1, 3))        # (N, C)
    union = jnp.sum(union_out, axis=(1, 3))        # (N, C)
    loss = 1.0 - (2.0 * inter + smooth) / jnp.maximum(union + smooth, 1e-8)
    return jnp.mean(loss)


def dice_loss(inputs: jax.Array, target: jax.Array, num_classes: int,
              smooth: float = 0.0, *, tile_hw=None, spatial_splits=None):
    """DiceLoss.forward with a dense NCHW target (soft labels allowed).

    inputs/target may be f32 or bf16 — they are streamed in their HBM dtype
    and upcast to f32 inside the kernel.
    """
    N, C, H, W = inputs.shape
    assert C == num_classes
    HW = H * W
    x3 = inputs.reshape(N, C, HW)
    t3 = target.reshape(N, C, HW)
    inter, union = _launch(x3, t3, labels=False, num_classes=C,
                           tile_hw=tile_hw, spatial_splits=spatial_splits)
    return _finish(inter, union, float(smooth))


def dice_loss_from_labels(inputs: jax.Array, labels: jax.Array, num_classes: int,
                          smooth: float = 0.0, *, tile_hw=None,
                          spatial_splits=None):
    """Fast path: integer class labels (N, H, W); one-hot rebuilt in-kernel.

    Pass int8/uint8 labels (num_classes <= 127) to minimize HBM traffic.
    """
    N, C, H, W = inputs.shape
    assert C == num_classes
    HW = H * W
    assert jnp.issubdtype(labels.dtype, jnp.integer)
    x3 = inputs.reshape(N, C, HW)
    lab3 = labels.reshape(N, 1, HW)
    inter, union = _launch(x3, lab3, labels=True, num_classes=C,
                           tile_hw=tile_hw, spatial_splits=spatial_splits)
    return _finish(inter, union, float(smooth))


def _reference_dice_loss(inputs, target, num_classes, smooth=0.0):
    N = inputs.shape[0]
    p = jax.nn.softmax(inputs, axis=1)
    inter = (p * target).reshape(N, num_classes, -1).sum(2)
    union = (p + target).reshape(N, num_classes, -1).sum(2)
    loss = 1.0 - (2.0 * inter + smooth) / jnp.maximum(union + smooth, 1e-8)
    return jnp.mean(loss)


if __name__ == "__main__":
    key = jax.random.PRNGKey(0)
    k1, k2, k3, k4, k5, k6 = jax.random.split(key, 6)
    smooth = 0.0

    # --- Test 1: f32 logits + dense f32 one-hot target (single spatial tile)
    N, C, H, W = 2, 4, 16, 16
    logits = jax.random.normal(k1, (N, C, H, W), dtype=jnp.float32)
    labels = jax.random.randint(k2, (N, H, W), 0, C)
    target = jax.nn.one_hot(labels, C, dtype=jnp.float32).transpose(0, 3, 1, 2)
    ref = _reference_dice_loss(logits, target, C, smooth)
    out = jax.block_until_ready(dice_loss(logits, target, C, smooth))
    assert jnp.allclose(out, ref, atol=1e-5, rtol=1e-5), (out, ref)

    # --- Test 2: forced spatial tiling + ragged last tile (HW=288, tile=128)
    N2, C2, H2, W2 = 2, 4, 16, 18
    logits2 = jax.random.normal(k3, (N2, C2, H2, W2), dtype=jnp.float32)
    labels2 = jax.random.randint(k4, (N2, H2, W2), 0, C2)
    target2 = jax.nn.one_hot(labels2, C2, dtype=jnp.float32).transpose(0, 3, 1, 2)
    ref2 = _reference_dice_loss(logits2, target2, C2, smooth)
    out2 = jax.block_until_ready(
        dice_loss(logits2, target2, C2, smooth, tile_hw=128))
    assert jnp.allclose(out2, ref2, atol=1e-5, rtol=1e-5), (out2, ref2)
    out2l = jax.block_until_ready(
        dice_loss_from_labels(logits2, labels2, C2, smooth, tile_hw=128))
    assert jnp.allclose(out2l, ref2, atol=1e-5, rtol=1e-5), (out2l, ref2)

    # --- Test 3: bf16 logits + int8 labels (low-HBM-traffic fast path)
    logits_bf16 = logits.astype(jnp.bfloat16)
    ref3 = _reference_dice_loss(logits_bf16.astype(jnp.float32), target, C, smooth)
    out3 = jax.block_until_ready(
        dice_loss_from_labels(logits_bf16, labels.astype(jnp.int8), C, smooth))
    assert jnp.allclose(out3, ref3, atol=1e-5, rtol=1e-5), (out3, ref3)

    # --- Test 4: explicit spatial split (v7x 2nd-TC path) with an overflow
    #     step (num_h=3 split across P=2 -> clamped + lane-masked extra tile)
    N4 = 1
    logits4 = jax.random.normal(k5, (N4, C2, H2, W2), dtype=jnp.float32)
    labels4 = jax.random.randint(k6, (N4, H2, W2), 0, C2)
    target4 = jax.nn.one_hot(labels4, C2, dtype=jnp.float32).transpose(0, 3, 1, 2)
    ref4 = _reference_dice_loss(logits4, target4, C2, smooth)
    out4 = jax.block_until_ready(
        dice_loss(logits4, target4, C2, smooth, tile_hw=128, spatial_splits=2))
    assert jnp.allclose(out4, ref4, atol=1e-5, rtol=1e-5), (out4, ref4)

    print("KERNEL_OK")
</pallas_src>

<mosaic_0001>
module attributes {stable_mosaic.version = 11 : i64} {
  func.func @_dice_partial_kernel(%arg0: i32, %arg1: i32, %arg2: i32, %arg3: memref<1x4x256xf32, #tpu.memory_space<vmem>>, %arg4: memref<1x4x256xf32, #tpu.memory_space<vmem>>, %arg5: memref<1x1x4x128xf32, #tpu.memory_space<vmem>>, %arg6: memref<1x1x4x128xf32, #tpu.memory_space<vmem>>) attributes {dimension_semantics = [#tpu.dimension_semantics<parallel>, #tpu.dimension_semantics<parallel>, #tpu.dimension_semantics<arbitrary>], iteration_bounds = array<i64: 2, 1, 1>, scalar_prefetch = 0 : i64, scratch_operands = 0 : i64, tpu.core_type = #tpu.core_type<tc>, window_params = [{transform_indices = @transform_0, window_bounds = array<i64: 1, 4, 256>}, {transform_indices = @transform_1, window_bounds = array<i64: 1, 4, 256>}, {transform_indices = @transform_2, window_bounds = array<i64: 1, 1, 4, 128>}, {transform_indices = @transform_3, window_bounds = array<i64: 1, 1, 4, 128>}]} {
    %c0_i32 = arith.constant 0 : i32
    %0 = arith.cmpi eq, %arg2, %c0_i32 : i32
    %1 = arith.extui %0 : i1 to i32
    %c0_i32_0 = arith.constant 0 : i32
    %2 = arith.cmpi ne, %1, %c0_i32_0 : i32
    scf.if %2 {
      %cst_30 = arith.constant 0.000000e+00 : f32
      %49 = vector.broadcast %cst_30 : f32 to vector<1x1x4x128xf32>
      %c0_31 = arith.constant 0 : index
      %c0_32 = arith.constant 0 : index
      %c0_33 = arith.constant 0 : index
      %c0_34 = arith.constant 0 : index
      %50 = vector.load %arg5[%c0_31, %c0_32, %c0_33, %c0_34] : memref<1x1x4x128xf32, #tpu.memory_space<vmem>>, vector<1x1x4x128xf32>
      tpu.vector_store %arg5[%c0_31, %c0_32, %c0_33, %c0_34], %49 {strides = array<i32>} : memref<1x1x4x128xf32, #tpu.memory_space<vmem>>, vector<1x1x4x128xf32>,
      %cst_35 = arith.constant 0.000000e+00 : f32
      %51 = vector.broadcast %cst_35 : f32 to vector<1x1x4x128xf32>
      %c0_36 = arith.constant 0 : index
      %c0_37 = arith.constant 0 : index
      %c0_38 = arith.constant 0 : index
      %c0_39 = arith.constant 0 : index
      %52 = vector.load %arg6[%c0_36, %c0_37, %c0_38, %c0_39] : memref<1x1x4x128xf32, #tpu.memory_space<vmem>>, vector<1x1x4x128xf32>
      tpu.vector_store %arg6[%c0_36, %c0_37, %c0_38, %c0_39], %51 {strides = array<i32>} : memref<1x1x4x128xf32, #tpu.memory_space<vmem>>, vector<1x1x4x128xf32>,
    } else {
    }
    %c0 = arith.constant 0 : index
    %c0_1 = arith.constant 0 : index
    %c0_2 = arith.constant 0 : index
    %c0_3 = arith.constant 0 : index
    %3 = vector.load %arg5[%c0, %c0_1, %c0_2, %c0_3] : memref<1x1x4x128xf32, #tpu.memory_space<vmem>>, vector<1x1x4x128xf32>
    %4 = vector.shape_cast %3 : vector<1x1x4x128xf32> to vector<4x128xf32>
    %c0_4 = arith.constant 0 : index
    %c0_5 = arith.constant 0 : index
    %c0_6 = arith.constant 0 : index
    %c0_7 = arith.constant 0 : index
    %5 = vector.load %arg6[%c0_4, %c0_5, %c0_6, %c0_7] : memref<1x1x4x128xf32, #tpu.memory_space<vmem>>, vector<1x1x4x128xf32>
    %6 = vector.shape_cast %5 : vector<1x1x4x128xf32> to vector<4x128xf32>
    %c0_8 = arith.constant 0 : index
    %c0_9 = arith.constant 0 : index
    %c0_10 = arith.constant 0 : index
    %7 = vector.load %arg3[%c0_8, %c0_9, %c0_10] : memref<1x4x256xf32, #tpu.memory_space<vmem>>, vector<1x4x128xf32>
    %8 = vector.shape_cast %7 : vector<1x4x128xf32> to vector<4x128xf32>
    %c0_11 = arith.constant 0 : index
    %c0_12 = arith.constant 0 : index
    %c0_13 = arith.constant 0 : index
    %9 = vector.load %arg4[%c0_11, %c0_12, %c0_13] : memref<1x4x256xf32, #tpu.memory_space<vmem>>, vector<1x4x128xf32>
    %10 = vector.shape_cast %9 : vector<1x4x128xf32> to vector<4x128xf32>
    %cst = arith.constant dense<0xFF800000> : vector<128xf32>
    %11 = vector.multi_reduction <maximumf>, %8, %cst [0] : vector<4x128xf32> to vector<128xf32>
    %12 = vector.shape_cast %11 : vector<128xf32> to vector<1x128xf32>
    %13 = vector.broadcast %12 : vector<1x128xf32> to vector<4x128xf32>
    %14 = arith.subf %8, %13 : vector<4x128xf32>
    %15 = math.exp %14 : vector<4x128xf32>
    %cst_14 = arith.constant dense<0.000000e+00> : vector<128xf32>
    %16 = vector.multi_reduction <add>, %15, %cst_14 [0] : vector<4x128xf32> to vector<128xf32>
    %17 = vector.shape_cast %16 : vector<128xf32> to vector<1x128xf32>
    %18 = tpu.reciprocal %17 : vector<1x128xf32> -> vector<1x128xf32>
    %19 = vector.broadcast %18 : vector<1x128xf32> to vector<4x128xf32>
    %20 = arith.mulf %15, %19 : vector<4x128xf32>
    %21 = arith.mulf %20, %10 : vector<4x128xf32>
    %22 = arith.addf %4, %21 : vector<4x128xf32>
    %23 = arith.addf %20, %10 : vector<4x128xf32>
    %24 = arith.addf %6, %23 : vector<4x128xf32>
    %c0_15 = arith.constant 0 : index
    %c0_16 = arith.constant 0 : index
    %c128 = arith.constant 128 : index
    %25 = vector.load %arg3[%c0_15, %c0_16, %c128] : memref<1x4x256xf32, #tpu.memory_space<vmem>>, vector<1x4x128xf32>
    %26 = vector.shape_cast %25 : vector<1x4x128xf32> to vector<4x128xf32>
    %c0_17 = arith.constant 0 : index
    %c0_18 = arith.constant 0 : index
    %c128_19 = arith.constant 128 : index
    %27 = vector.load %arg4[%c0_17, %c0_18, %c128_19] : memref<1x4x256xf32, #tpu.memory_space<vmem>>, vector<1x4x128xf32>
    %28 = vector.shape_cast %27 : vector<1x4x128xf32> to vector<4x128xf32>
    %cst_20 = arith.constant dense<0xFF800000> : vector<128xf32>
    %29 = vector.multi_reduction <maximumf>, %26, %cst_20 [0] : vector<4x128xf32> to vector<128xf32>
    %30 = vector.shape_cast %29 : vector<128xf32> to vector<1x128xf32>
    %31 = vector.broadcast %30 : vector<1x128xf32> to vector<4x128xf32>
    %32 = arith.subf %26, %31 : vector<4x128xf32>
    %33 = math.exp %32 : vector<4x128xf32>
    %cst_21 = arith.constant dense<0.000000e+00> : vector<128xf32>
    %34 = vector.multi_reduction <add>, %33, %cst_21 [0] : vector<4x128xf32> to vector<128xf32>
    %35 = vector.shape_cast %34 : vector<128xf32> to vector<1x128xf32>
    %36 = tpu.reciprocal %35 : vector<1x128xf32> -> vector<1x128xf32>
    %37 = vector.broadcast %36 : vector<1x128xf32> to vector<4x128xf32>
    %38 = arith.mulf %33, %37 : vector<4x128xf32>
    %39 = arith.mulf %38, %28 : vector<4x128xf32>
    %40 = arith.addf %22, %39 : vector<4x128xf32>
    %41 = arith.addf %38, %28 : vector<4x128xf32>
    %42 = arith.addf %24, %41 : vector<4x128xf32>
    %c0_22 = arith.constant 0 : index
    %c0_23 = arith.constant 0 : index
    %c0_24 = arith.constant 0 : index
    %c0_25 = arith.constant 0 : index
    %43 = vector.load %arg5[%c0_22, %c0_23, %c0_24, %c0_25] : memref<1x1x4x128xf32, #tpu.memory_space<vmem>>, vector<1x1x4x128xf32>
    %44 = vector.shape_cast %43 : vector<1x1x4x128xf32> to vector<4x128xf32>
    %45 = vector.shape_cast %40 : vector<4x128xf32> to vector<1x1x4x128xf32>
    tpu.vector_store %arg5[%c0_22, %c0_23, %c0_24, %c0_25], %45 {strides = array<i32>} : memref<1x1x4x128xf32, #tpu.memory_space<vmem>>, vector<1x1x4x128xf32>,
    %c0_26 = arith.constant 0 : index
    %c0_27 = arith.constant 0 : index
    %c0_28 = arith.constant 0 : index
    %c0_29 = arith.constant 0 : index
    %46 = vector.load %arg6[%c0_26, %c0_27, %c0_28, %c0_29] : memref<1x1x4x128xf32, #tpu.memory_space<vmem>>, vector<1x1x4x128xf32>
    %47 = vector.shape_cast %46 : vector<1x1x4x128xf32> to vector<4x128xf32>
    %48 = vector.shape_cast %42 : vector<4x128xf32> to vector<1x1x4x128xf32>
    tpu.vector_store %arg6[%c0_26, %c0_27, %c0_28, %c0_29], %48 {strides = array<i32>} : memref<1x1x4x128xf32, #tpu.memory_space<vmem>>, vector<1x1x4x128xf32>,
    return
  }
  func.func @transform_0(%arg0: i32, %arg1: i32, %arg2: i32) -> (i32, i32, i32) {
    %c1_i32 = arith.constant 1 : i32
    %0 = arith.muli %arg1, %c1_i32 : i32
    %1 = arith.addi %0, %arg2 : i32
    %c0_i32 = arith.constant 0 : i32
    %c0_i32_0 = arith.constant 0 : i32
    return %arg0, %c0_i32, %1 : i32, i32, i32
  }
  func.func @transform_1(%arg0: i32, %arg1: i32, %arg2: i32) -> (i32, i32, i32) {
    %c1_i32 = arith.constant 1 : i32
    %0 = arith.muli %arg1, %c1_i32 : i32
    %1 = arith.addi %0, %arg2 : i32
    %c0_i32 = arith.constant 0 : i32
    %c0_i32_0 = arith.constant 0 : i32
    return %arg0, %c0_i32, %1 : i32, i32, i32
  }
  func.func @transform_2(%arg0: i32, %arg1: i32, %arg2: i32) -> (i32, i32, i32, i32) {
    %c0_i32 = arith.constant 0 : i32
    %c0_i32_0 = arith.constant 0 : i32
    %c0_i32_1 = arith.constant 0 : i32
    return %arg0, %arg1, %c0_i32, %c0_i32_0 : i32, i32, i32, i32
  }
  func.func @transform_3(%arg0: i32, %arg1: i32, %arg2: i32) -> (i32, i32, i32, i32) {
    %c0_i32 = arith.constant 0 : i32
    %c0_i32_0 = arith.constant 0 : i32
    %c0_i32_1 = arith.constant 0 : i32
    return %arg0, %arg1, %c0_i32, %c0_i32_0 : i32, i32, i32, i32
  }
}

</mosaic_0001>

<bundles_post_ra>
// kernel: tpu_custom_call.1
= control target key start
LH: loop header
LB: loop body
LE: loop exit
PB: predicated region body
PF: predicated region fallthrough
CT: control target
= control target key end

     0   :  { %9 = vsyncpa [#allocation3], 0  ;;  %s1097_s0 = inlined_call_operand.hbm [shape: f32[2,4,256], index: 0, kind: input, shape index: {}]   ;;  %s1098_s1 = inlined_call_operand.hbm [shape: f32[2,4,256], index: 1, kind: input, shape index: {}]   ;;  %s1099_s2 = inlined_call_operand.hbm [shape: f32[2,1,4,128], index: 2, kind: output, shape index: {0}]   ;;  %s1100_s3 = inlined_call_operand.hbm [shape: f32[2,1,4,128], index: 3, kind: output, shape index: {1}]  }
   0x1   :  { %11 = vsyncpa [#allocation3 + $0x1], 0 }
   0x2   :  { %12 = vsyncpa [#allocation6], 0 }
   0x3   :  { %14 = vsyncpa [#allocation6 + $0x1], 0 }
   0x4   :  { %15 = vsyncpa [#allocation4], 0 }
   0x5   :  { %17 = vsyncpa [#allocation4 + $0x1], 0 }
   0x6   :  { %18 = vsyncpa [#allocation9], 0 }
   0x7   :  { %20 = vsyncpa [#allocation9 + $0x1], 0  ;;  %s827_s12 = smov 0   ;;  %s829_s13 = smov 0  }
   0x8   :  { %s831_s14 = smov 0   ;;  %s833_s15 = smov 0  }
   0x9   :  { %s835_s16 = smov 0   ;;  %s837_s17 = smov 0  }
   0xa LB: > { %s518_s18 = sadd.s32 4294967295, %s800_s17   ;;  %s519_s19 = sadd.s32 4294967294, %s800_s17   ;;  %s800_s17 = sphi %s837_s17, %s26_s17   ;;  %s796_s16 = sphi %s835_s16, %s1120_s16   ;;  %s792_s15 = sphi %s833_s15, %s1119_s15   ;;  %s788_s14 = sphi %s831_s14, %s1118_s14   ;;  %s784_s13 = sphi %s829_s13, %s1117_s13   ;;  %s780_s12 = sphi %s827_s12, %s1116_s12  }
   0xb   : > { %s45_s20 = sadd.s32 1, %s796_s16  ;;  %s56_s21 = sadd.s32 1, %s788_s14 }
   0xc   : > { %p47_p0 = scmp.ge.s32.totalorder %s45_s20, 2  ;;  %p63_p1 = scmp.ne.s32.totalorder %s788_s14, %s784_s13 }
   0xd   : > { %p64_p2 = scmp.eq.s32.totalorder %s800_s17, 0  ;;  %p69_p3 = scmp.ne.s32.totalorder %s784_s13, %s780_s12 }
   0xe   : > { %s1122_s20 = smov (%p47_p0, %s45_s20), 0  ;;  %p70_p5 = scmp.eq.s32.totalorder %s518_s18, 0 }
   0xf   : > { %p868_p4 = por %p64_p2, %p63_p1  ;;  %s51_s23 = ssub.s32 %s796_s16, %s1122_s20 }
  0x10   : > { %p125_p6 = scmp.eq.s32.totalorder %s518_s18, 1  ;;  %p54_p7 = scmp.eq.s32.totalorder %s51_s23, 0 }
  0x11   : > { %p874_p8 = por %p70_p5, %p69_p3  ;;  %p131_p10 = scmp.eq.s32.totalorder %s519_s19, 1 }
  0x12   : > { %p878_p9 = por %p125_p6, %p63_p1  ;;  %p563_p13 = scmp.lt.s32.totalorder %s800_s17, 2 }
  0x13   : > { %s1104_s24 = scalar_select %p874_p8, 1, 0 }
  0x14   : > { %s1105_s25 = scalar_select %p878_p9, 1, 0 }
  0x15   : > { %s883_s26 = scalar_select %p54_p7, %s788_s14, %s56_s21  }
  0x16   : > { %p885_p11 = por %p131_p10, %p69_p3  ;;  %s892_s28 = sand.u32 1, %s788_s14  }
  0x17   : > { %s522_s29 = sshll.u32 %s892_s28, 3  ;;  %s539_s30 = sshll.u32 %s796_s16, 7 }
  0x18   : > { %s1106_s27 = scalar_select %p885_p11, 1, 0 }
  0x19   : > { %s901_s6 = scalar_lea.hbm %s1097_s0, %s539_s30  ;;  %s183_s7 = scalar_lea.vmem [#allocation2], %s522_s29 }
  0x1a   : > { %s194_s8 = sshll.u32 %s183_s7, 4  ;;  %p909_p0 = pnand %p563_p13, %p868_p4  ;;  %s905_s8 = int_to_ptr.vmem [resolvable:$true] %s194_s8 }
  0x1b   : > { %s180_s10 = scalar_lea.sflag [#allocation3], %s892_s28  ;;  %s622_s11 = scalar_lea.hbm %s901_s6, 128 }
  0x1c   : > { %p623_p3 = scmp.ne.s32.totalorder %s901_s6, %s622_s11  ;;  %p624_p5 = pneg %p909_p0 }
  0x1d   : > { %s627_s21 = scalar_lea.hbm %s1097_s0, 256  ;;  %p628_p4 = scmp.lt.u32.totalorder %s901_s6, %s1097_s0 }
  0x1e   : > { %p625_p6 = pnand %p624_p5, %p623_p3  ;;  %p629_p10 = scmp.lt.u32.totalorder %s627_s21, %s622_s11 }
  0x1f   : > { %p631_p12 = scmp.lt.u32.totalorder %s622_s11, %s901_s6 }
  0x20   : > { %p626_p7 = pneg %p625_p6  ;;  %p630_p13 = por %p629_p10, %p628_p4 }
  0x22   : > { %p632_p1 = por %p631_p12, %p630_p13 }
  0x24   : > { %p633_p2 = pnand %p632_p1, %p626_p7 }
  0x26   : > { %636 = shalt.err (!%p633_p2)
}
  0x27   : > { %s637_s4 = scalar_lea.vmem %s905_s8, 128  ;;  %s802_s5 = smov [#allocation2]  }
  0x28   : > { %p638_p3 = scmp.ne.s32.totalorder %s905_s8, %s637_s4  ;;  %s642_s7 = sshll.u32 %s802_s5, 4  ;;  %s643_s7 = int_to_ptr.vmem [resolvable:$false] %s642_s7 }
  0x29   : > { %s644_s18 = scalar_lea.vmem %s643_s7, 256  ;;  %p645_p9 = scmp.lt.s32.totalorder %s905_s8, %s643_s7 }
  0x2a   : > { %p640_p6 = pnand %p638_p3, %p624_p5  ;;  %p646_p4 = scmp.lt.s32.totalorder %s644_s18, %s637_s4 }
  0x2c   : > { %p641_p11 = pneg %p640_p6  ;;  %p647_p10 = por %p646_p4, %p645_p9 }
  0x2e   : > { %p648_p12 = pnand %p647_p10, %p641_p11 }
  0x30   : > { %651 = shalt.err (!%p648_p12)
}
  0x31   : > { %552 = dma.hbm_to_vmem [thread:$0]  (!%p909_p0), %s901_s6, 128, %s905_s8, %s180_s10  }
  0x32   : > { %p1108_p1 = scmp.lt.s32.totalorder %s800_s17, 3  ;;  %p1109_p2 = scmp.ge.s32.totalorder %s800_s17, 1 }
  0x33   : > { %s954_s22 = scalar_lea.hbm %s1098_s1, %s539_s30  ;;  %s205_s23 = scalar_lea.vmem [#allocation5], %s522_s29 }
  0x34   : > { %p945_p7 = pnand %p1109_p2, %p1108_p1  ;;  %s216_s4 = sshll.u32 %s205_s23, 4  ;;  %s217_s4 = int_to_ptr.vmem [resolvable:$true] %s216_s4 }
  0x35   : > { %s202_s6 = scalar_lea.sflag [#allocation6], %s892_s28  ;;  %s652_s8 = scalar_lea.hbm %s954_s22, 128 }
  0x36   : > { %s1110_s11 = scalar_select %p945_p7, 1, 0 }
  0x37   : > { %p653_p9 = scmp.ne.s32.totalorder %s954_s22, %s652_s8  ;;  %s657_s30 = scalar_lea.hbm %s1098_s1, 256 }
  0x38   : > { %p658_p3 = scmp.lt.u32.totalorder %s954_s22, %s1098_s1  ;;  %p659_p6 = scmp.lt.u32.totalorder %s657_s30, %s652_s8 }
  0x39   : > { %p655_p11 = pnand %p653_p9, %p624_p5  ;;  %p661_p10 = scmp.lt.u32.totalorder %s652_s8, %s954_s22 }
  0x3a   : > { %p660_p4 = por %p659_p6, %p658_p3 }
  0x3b   : > { %p656_p13 = pneg %p655_p11 }
  0x3c   : > { %p662_p12 = por %p661_p10, %p660_p4 }
  0x3e   : > { %p663_p1 = pnand %p662_p12, %p656_p13 }
  0x40   : > { %666 = shalt.err (!%p663_p1)
}
  0x41   : > { %s667_s28 = scalar_lea.vmem %s217_s4, 128  ;;  %s803_s29 = smov [#allocation5]  }
  0x42   : > { %p668_p2 = scmp.ne.s32.totalorder %s217_s4, %s667_s28  ;;  %s672_s19 = sshll.u32 %s803_s29, 4  ;;  %s673_s19 = int_to_ptr.vmem [resolvable:$false] %s672_s19 }
  0x43   : > { %s674_s21 = scalar_lea.vmem %s673_s19, 256  ;;  %p675_p8 = scmp.lt.s32.totalorder %s217_s4, %s673_s19 }
  0x44   : > { %p670_p9 = pnand %p668_p2, %p624_p5  ;;  %p676_p7 = scmp.lt.s32.totalorder %s674_s21, %s667_s28 }
  0x46   : > { %p671_p11 = pneg %p670_p9  ;;  %p677_p3 = por %p676_p7, %p675_p8 }
  0x48   : > { %p678_p6 = pnand %p677_p3, %p671_p11 }
  0x4a   : > { %681 = shalt.err (!%p678_p6)
}
  0x4b   : > { %555 = dma.hbm_to_vmem [thread:$0]  (!%p909_p0), %s954_s22, 128, %s217_s4, %s202_s6  }
  0x4c   : > { %p1111_p13 = scmp.ne.s32.totalorder %s1110_s11, 0 }
  0x4d   : > { %s981_s23 = sand.u32 (!%p1111_p13), 1, %s784_s13   ;;  %p1112_p5 = scmp.ne.s32.totalorder (!%p1111_p13), %s1104_s24, 0 }
  0x4e   : > { %225 = sbr.rel (%p1111_p13) target bundleno = 186 (0xba), region = 28  ;;  %s529_s8 = sshll.u32 (!%p1111_p13), %s981_s23, 3 }
  0x4f   : > { %s228_s10 = scalar_lea.sflag (!%p1111_p13), [#allocation3], %s981_s23  ;;  %s231_s5 = scalar_lea.vmem (!%p1111_p13), [#allocation2], %s529_s8 }
  0x55   : > { %763 = dma.done.wait (%p1112_p5), %s228_s10, 128  }
  0x56   : > { %765 = vsyncadd (%p1112_p5), %s228_s10, 4294967168  ;;  %s237_s9 = scalar_lea.sflag [#allocation6], %s981_s23  ;;  %s990_s22 = scalar_lea.vmem [#allocation5], %s529_s8 }
  0x57   : > { %767 = dma.done.wait (%p1112_p5), %s237_s9, 128  }
  0x58   : > { %769 = vsyncadd (%p1112_p5), %s237_s9, 4294967168  ;;  %s531_s11 = sshll.u32 %s981_s23, 2  ;;  %v804_v0 = vmov 0.0   ;;  %vm287_vm0 = vcmask 1043456   ;;  %v285_v1 = vld [vmem:[%s231_s5] sm:$0xf] }
  0x59   : > { %s997_s4 = scalar_lea.vmem [#allocation7], %s531_s11  ;;  %s1000_s6 = scalar_lea.vmem [#allocation8], %s531_s11  ;;  %v311_v2 = vld [vmem:[%s231_s5 + $0x4] sm:$0xf]  ;;  %v288_v3 = vsel %vm287_vm0, %v285_v1, -inf }
  0x5a   : > { %281 = vst [vmem:[%s997_s4] sm:$0xf] %v804_v0  ;;  %282 = vst [vmem:[%s1000_s6] sm:$0xf] %v804_v0  ;;  %v313_v4 = vsel %vm287_vm0, %v311_v2, -inf  ;;  %v289_v5 = vrot.slane %v288_v3, 4  ;;  %v286_v38 = vld [vmem:[%s990_s22] sm:$0xf] }
  0x5b   : > { %v314_v6 = vrot.slane %v313_v4, 4  ;;  %v312_v41 = vld [vmem:[%s990_s22 + $0x4] sm:$0xf]  ;;  %s535_s24 = sshll.u32 %s792_s15, 6  ;;  %s358_s30 = sshll.u32 %s997_s4, 4  ;;  %s1019_s30 = int_to_ptr.vmem [resolvable:$true] %s358_s30 }
  0x5c   : > { %v290_v7 = vmax.f32 %v288_v3, %v289_v5  ;;  %s372_s7 = sshll.u32 %s1000_s6, 4  ;;  %s1017_s29 = scalar_lea.hbm %s1099_s2, %s535_s24  ;;  %s1026_s7 = int_to_ptr.vmem [resolvable:$true] %s372_s7 }
  0x5d   : > { %v315_v8 = vmax.f32 %v313_v4, %v314_v6  ;;  %s1024_s15 = scalar_lea.hbm %s1100_s3, %s535_s24  ;;  %s339_s8 = scalar_lea.sflag [#allocation4], %s981_s23 }
  0x5e   : > { %v291_v9 = vrot.slane %v290_v7, 2  ;;  %s682_s10 = scalar_lea.vmem %s1019_s30, 64  ;;  %p1113_p0 = scmp.ne.s32.totalorder %s1105_s25, 0 }
  0x5f   : > { %v316_v10 = vrot.slane %v315_v8, 2  ;;  %p683_p8 = scmp.ne.s32.totalorder %s1019_s30, %s682_s10  ;;  %s805_s5 = smov [#allocation7]  }
  0x60   : > { %v292_v11 = vmax.f32 %v290_v7, %v291_v9  ;;  %s686_s9 = sshll.u32 %s805_s5, 4  ;;  %s687_s9 = int_to_ptr.vmem [resolvable:$false] %s686_s9 }
  0x61   : > { %v317_v12 = vmax.f32 %v315_v8, %v316_v10  ;;  %v283_v42 = vld [vmem:[%s997_s4] sm:$0xf]  ;;  %v284_v44 = vld [vmem:[%s1000_s6] sm:$0xf]  ;;  %p684_p7 = pnand %p683_p8, %p1113_p0  ;;  %s688_s22 = scalar_lea.vmem %s687_s9, 128 }
  0x62   : > { %v293_v13 = vrot.slane %v292_v11, 1  ;;  %p689_p10 = scmp.lt.s32.totalorder %s1019_s30, %s687_s9  ;;  %p690_p12 = scmp.lt.s32.totalorder %s688_s22, %s682_s10 }
  0x63   : > { %v318_v14 = vrot.slane %v317_v12, 1  ;;  %p685_p4 = pneg %p684_p7 }
  0x64   : > { %v294_v15 = vmax.f32 %v292_v11, %v293_v13  ;;  %p691_p1 = por %p690_p12, %p689_p10 }
  0x65   : > { %v319_v16 = vmax.f32 %v317_v12, %v318_v14 }
  0x66   : > { %v295_v17 = vsub.f32 %v285_v1, %v294_v15  ;;  %p692_p2 = pnand %p691_p1, %p685_p4 }
  0x67   : > { %v320_v18 = vsub.f32 %v311_v2, %v319_v16 }
  0x68   : > { %v296_v19 = vmul.f32 1.442695, %v295_v17 }
  0x69   : > { %v321_v20 = vmul.f32 1.442695, %v320_v18 }
  0x6a   : > { %614 = vpow2.f32 %v296_v19 }
  0x6b   : > { %616 = vpow2.f32 %v321_v20 }
  0x74   : > { %v615_v21 = vpop.eup %614 }
  0x75   : > { %v617_v22 = vpop.eup %616  ;;  %v298_v23 = vsel %vm287_vm0, %v615_v21, 0.0 }
  0x76   : > { %v299_v24 = vrot.slane %v298_v23, 4  ;;  %v323_v25 = vsel %vm287_vm0, %v617_v22, 0.0 }
  0x77   : > { %v324_v26 = vrot.slane %v323_v25, 4 }
  0x78   : > { %v300_v27 = vadd.f32 %v299_v24, %v298_v23 }
  0x79   : > { %v325_v28 = vadd.f32 %v324_v26, %v323_v25 }
  0x7a   : > { %v301_v29 = vrot.slane %v300_v27, 2 }
  0x7b   : > { %v326_v30 = vrot.slane %v325_v28, 2 }
  0x7c   : > { %v302_v31 = vadd.f32 %v301_v29, %v300_v27 }
  0x7d   : > { %v327_v32 = vadd.f32 %v326_v30, %v325_v28 }
  0x7e   : > { %v303_v33 = vrot.slane %v302_v31, 1 }
  0x7f   : > { %v328_v34 = vrot.slane %v327_v32, 1 }
  0x80   : > { %v304_v35 = vadd.f32 %v303_v33, %v302_v31 }
  0x81   : > { %v329_v36 = vadd.f32 %v328_v34, %v327_v32 }
  0x82   : > { %618 = vrcp.f32 %v304_v35 }
  0x83   : > { %620 = vrcp.f32 %v329_v36 }
  0x8c   : > { %v619_v37 = vpop.eup %618 }
  0x8d   : > { %v621_v39 = vpop.eup %620  ;;  %v306_v40 = vmul.f32 %v619_v37, %v615_v21 }
  0x8e   : > { %v331_v43 = vmul.f32 %v621_v39, %v617_v22 }
  0x8f   : > { %v307_v45 = vmul.f32 %v306_v40, %v286_v38  ;;  %v309_v46 = vadd.f32 %v306_v40, %v286_v38 }
  0x90   : > { %v332_v47 = vmul.f32 %v331_v43, %v312_v41  ;;  %v334_v48 = vadd.f32 %v331_v43, %v312_v41 }
  0x91   : > { %v308_v49 = vadd.f32 %v307_v45, %v283_v42  ;;  %v310_v50 = vadd.f32 %v309_v46, %v284_v44 }
  0x93   : > { %v333_v51 = vadd.f32 %v332_v47, %v308_v49  ;;  %v335_v52 = vadd.f32 %v334_v48, %v310_v50 }
  0x95   : > { %336 = vst [vmem:[%s997_s4] sm:$0xf] %v333_v51  ;;  %337 = vst [vmem:[%s1000_s6] sm:$0xf] %v335_v52 }
  0x96   : > { %695 = shalt.err (!%p692_p2)
}
  0x97   : > { %s696_s11 = scalar_lea.hbm %s1017_s29, 64  ;;  %s700_s24 = scalar_lea.hbm %s1099_s2, 128 }
  0x98   : > { %p697_p9 = scmp.ne.s32.totalorder %s1017_s29, %s696_s11  ;;  %p701_p6 = scmp.lt.u32.totalorder %s1017_s29, %s1099_s2 }
  0x99   : > { %p702_p13 = scmp.lt.u32.totalorder %s700_s24, %s696_s11  ;;  %p704_p8 = scmp.lt.u32.totalorder %s696_s11, %s1017_s29 }
  0x9a   : > { %p698_p11 = pnand %p697_p9, %p1113_p0 }
  0x9b   : > { %p703_p5 = por %p702_p13, %p701_p6 }
  0x9c   : > { %p699_p3 = pneg %p698_p11 }
  0x9d   : > { %p705_p7 = por %p704_p8, %p703_p5 }
  0x9f   : > { %p706_p4 = pnand %p705_p7, %p699_p3 }
  0xa1   : > { %709 = shalt.err (!%p706_p4)
}
  0xa2   : > { %545 = dma.vmem_to_hbm [thread:$0]  (%p1113_p0), %s1019_s30, 64, %s1017_s29, %s339_s8  }
  0xa3   : > { %s344_s19 = scalar_lea.sflag [#allocation9], %s981_s23  ;;  %s710_s21 = scalar_lea.vmem %s1026_s7, 64 }
  0xa4   : > { %p711_p10 = scmp.ne.s32.totalorder %s1026_s7, %s710_s21  ;;  %s806_s10 = smov [#allocation8]  }
  0xa5   : > { %s714_s5 = sshll.u32 %s806_s10, 4  ;;  %s715_s5 = int_to_ptr.vmem [resolvable:$false] %s714_s5 }
  0xa6   : > { %p712_p12 = pnand %p711_p10, %p1113_p0  ;;  %s716_s9 = scalar_lea.vmem %s715_s5, 128 }
  0xa7   : > { %p717_p2 = scmp.lt.s32.totalorder %s1026_s7, %s715_s5  ;;  %p718_p9 = scmp.lt.s32.totalorder %s716_s9, %s710_s21 }
  0xa8   : > { %p713_p1 = pneg %p712_p12 }
  0xa9   : > { %p719_p11 = por %p718_p9, %p717_p2 }
  0xab   : > { %p720_p3 = pnand %p719_p11, %p713_p1 }
  0xad   : > { %723 = shalt.err (!%p720_p3)
}
  0xae   : > { %s724_s23 = scalar_lea.hbm %s1024_s15, 64  ;;  %s728_s8 = scalar_lea.hbm %s1100_s3, 128 }
  0xaf   : > { %p725_p6 = scmp.ne.s32.totalorder %s1024_s15, %s724_s23  ;;  %p729_p8 = scmp.lt.u32.totalorder %s1024_s15, %s1100_s3 }
  0xb0   : > { %p730_p7 = scmp.lt.u32.totalorder %s728_s8, %s724_s23  ;;  %p732_p10 = scmp.lt.u32.totalorder %s724_s23, %s1024_s15 }
  0xb1   : > { %p726_p13 = pnand %p725_p6, %p1113_p0 }
  0xb2   : > { %p731_p4 = por %p730_p7, %p729_p8 }
  0xb3   : > { %p727_p5 = pneg %p726_p13 }
  0xb4   : > { %p733_p12 = por %p732_p10, %p731_p4 }
  0xb6   : > { %p734_p1 = pnand %p733_p12, %p727_p5 }
  0xb8   : > { %737 = shalt.err (!%p734_p1)
}
  0xb9   : > { %546 = dma.vmem_to_hbm [thread:$0]  (%p1113_p0), %s1026_s7, 64, %s1024_s15, %s344_s19  }
  0xba PF: > { %s384_s4 = sand.u32 1, %s780_s12   ;;  %p1114_p2 = scmp.ne.s32.totalorder %s1106_s27, 0 }
  0xbb   : > { %p1115_p9 = scmp.ge.s32.totalorder %s800_s17, 2  ;;  %s385_s6 = scalar_lea.sflag [#allocation4], %s384_s4 }
  0xbd   : > { %p557_p11 = pnand %p1115_p9, %p1114_p2 }
  0xbf   : > { %771 = dma.done.wait (!%p557_p11), %s385_s6, 64  }
  0xc0   : > { %773 = vsyncadd (!%p557_p11), %s385_s6, 4294967232  ;;  %s394_s24 = scalar_lea.sflag [#allocation9], %s384_s4 }
  0xc1   : > { %775 = dma.done.wait (!%p557_p11), %s394_s24, 64  }
  0xc2   : > { %777 = vsyncadd (!%p557_p11), %s394_s24, 4294967232  ;;  %s26_s17 = sadd.s32 1, %s800_s17   ;;  %s1116_s12 = smov %s784_s13 }
  0xc3   : > { %p23_p3 = scmp.ge.s32.totalorder %s26_s17, 4   ;;  %s1117_s13 = smov %s788_s14 }
  0xc4   : > { %s1118_s14 = smov %s883_s26  ;;  %s1119_s15 = smov %s796_s16 }
  0xc5   : > { %s1120_s16 = smov %s1122_s20  ;;  %25 = sbr.rel (!%p23_p3) target bundleno = 10 (0xa), region = 107 }
  0xcc   :  { %399 = vsyncpa [#allocation3], 1 }
  0xcd   :  { %401 = vsyncpa [#allocation3 + $0x1], 1 }
  0xce   :  { %402 = vsyncpa [#allocation6], 1 }
  0xcf   :  { %404 = vsyncpa [#allocation6 + $0x1], 1 }
  0xd0   :  { %405 = vsyncpa [#allocation4], 1 }
  0xd1   :  { %407 = vsyncpa [#allocation4 + $0x1], 1 }
  0xd2   :  { %408 = vsyncpa [#allocation9], 1 }
  0xd3   :  { %410 = vsyncpa [#allocation9 + $0x1], 1 }

</bundles_post_ra>
